<compile_context>
chip_gen: v7x
topology: tpu7x:2x2x1
jax: 0.10.0
libtpu: 0.0.40
codegen_flags: <defaults>
</compile_context>

<pallas_src>
import math

import jax
import jax.numpy as jnp
from jax import lax
from jax.experimental import pallas as pl
from jax.experimental.pallas import tpu as pltpu

MIN_LOG_STD = -20.0   # dead after ReLU (kept for documentation of module spec)
MAX_LOG_STD = 2.0

HIDDEN = 256


def _round_up(x, m):
    return ((x + m - 1) // m) * m


def actor_kernel(x_ref, w1_ref, b1_ref, w2_ref, b2_ref, wh_ref, bh_ref, out_ref):
    # x tile: (block_b, state_dim) bf16
    x = x_ref[...]

    # fc1 + relu   (bf16 x bf16 -> f32 accumulate; elementwise in f32)
    h1 = jnp.dot(x, w1_ref[...], preferred_element_type=jnp.float32) + b1_ref[...]
    h1 = jnp.maximum(h1, 0.0)

    # fc2 + relu
    h2 = jnp.dot(h1.astype(jnp.bfloat16), w2_ref[...],
                 preferred_element_type=jnp.float32) + b2_ref[...]
    h2 = jnp.maximum(h2, 0.0)

    # fused heads: one (256, 2) matmul -> (block_b, 2); col 0 = mu, col 1 = log_std
    y = jnp.dot(h2.astype(jnp.bfloat16), wh_ref[...],
                preferred_element_type=jnp.float32) + bh_ref[...]

    # log_std epilogue: clamp(relu(.), -20, 2) == min(max(., 0), 2)
    ls = jnp.minimum(jnp.maximum(y, 0.0), MAX_LOG_STD)
    col = lax.broadcasted_iota(jnp.int32, y.shape, 1)
    out_ref[...] = jnp.where(col == 0, y, ls)


def prepare_params(params_f32):
    """Fold the two heads together and pre-cast matmul weights to bf16 (once)."""
    w1, b1, w2, b2, wmu, bmu, wls, bls = params_f32
    w_head = jnp.concatenate([wmu, wls], axis=1).astype(jnp.bfloat16)   # (256, 2)
    b_head = jnp.concatenate([bmu, bls], axis=1)                        # (1, 2) f32
    return (w1.astype(jnp.bfloat16), b1,
            w2.astype(jnp.bfloat16), b2,
            w_head, b_head)


def actor_forward(x, prepared_params, *, max_block_b=512):
    """x: (B, state_dim) float32.  Returns (mu, log_std), each (B, 1) float32."""
    B, state_dim = x.shape
    w1, b1, w2, b2, wh, bh = prepared_params

    # Batch tile: multiple of 8 sublanes, capped, weights resident across grid.
    block_b = min(max_block_b, _round_up(B, 8))
    padded_b = _round_up(B, block_b)
    grid = (pl.cdiv(padded_b, block_b),)

    xb = x.astype(jnp.bfloat16)
    if padded_b != B:
        xb = jnp.pad(xb, ((0, padded_b - B), (0, 0)))

    resident = lambda a: pl.BlockSpec(a.shape, lambda i: (0,) * a.ndim)

    out = pl.pallas_call(
        actor_kernel,
        out_shape=jax.ShapeDtypeStruct((padded_b, 2), jnp.float32),
        grid=grid,
        in_specs=[
            pl.BlockSpec((block_b, state_dim), lambda i: (i, 0)),  # x tiles
            resident(w1), resident(b1),
            resident(w2), resident(b2),
            resident(wh), resident(bh),
        ],
        out_specs=pl.BlockSpec((block_b, 2), lambda i: (i, 0)),
        compiler_params=pltpu.CompilerParams(
            dimension_semantics=("parallel",)),
    )(xb, w1, b1, w2, b2, wh, bh)

    mu = out[:B, 0:1]
    log_std = out[:B, 1:2]
    return mu, log_std


def init_params(key, state_dim):
    """Deterministic init mimicking PyTorch nn.Linear default (U[-1/sqrt(fan_in), +])."""
    def linear(key, fan_in, fan_out):
        kw, kb = jax.random.split(key)
        bound = 1.0 / math.sqrt(fan_in)
        # stored as (in, out) so the kernel computes x @ W
        w = jax.random.uniform(kw, (fan_in, fan_out), jnp.float32, -bound, bound)
        b = jax.random.uniform(kb, (1, fan_out), jnp.float32, -bound, bound)
        return w, b

    k1, k2, k3, k4 = jax.random.split(key, 4)
    w1, b1 = linear(k1, state_dim, HIDDEN)
    w2, b2 = linear(k2, HIDDEN, HIDDEN)
    wmu, bmu = linear(k3, HIDDEN, 1)
    wls, bls = linear(k4, HIDDEN, 1)
    return (w1, b1, w2, b2, wmu, bmu, wls, bls)


def actor_reference(x, prepared_params):
    """Pure-JAX reference with the same precision policy as the kernel."""
    w1, b1, w2, b2, wh, bh = prepared_params
    xb = x.astype(jnp.bfloat16)
    h1 = jnp.maximum(jnp.dot(xb, w1, preferred_element_type=jnp.float32) + b1, 0.0)
    h2 = jnp.maximum(jnp.dot(h1.astype(jnp.bfloat16), w2,
                             preferred_element_type=jnp.float32) + b2, 0.0)
    y = jnp.dot(h2.astype(jnp.bfloat16), wh,
                preferred_element_type=jnp.float32) + bh
    mu = y[:, 0:1]
    ls = jnp.clip(jnp.maximum(y[:, 1:2], 0.0), MIN_LOG_STD, MAX_LOG_STD)
    return mu, ls


if __name__ == "__main__":
    batch, state_dim = 2, 16
    key = jax.random.PRNGKey(0)
    kx, kp, kx2 = jax.random.split(key, 3)

    params = init_params(kp, state_dim)
    prepared = prepare_params(params)

    # Small-batch case (pads 2 -> 8 rows, single grid step).
    x = jax.random.normal(kx, (batch, state_dim), jnp.float32)
    mu, log_std = actor_forward(x, prepared)
    jax.block_until_ready((mu, log_std))

    mu_ref, ls_ref = actor_reference(x, prepared)
    assert mu.shape == (batch, 1) and log_std.shape == (batch, 1)
    assert jnp.allclose(mu, mu_ref, atol=1e-3, rtol=1e-3), "mu mismatch"
    assert jnp.allclose(log_std, ls_ref, atol=1e-3, rtol=1e-3), "log_std mismatch"

    # Larger batch exercises the batch grid (multiple weight-resident steps).
    big_b = 1000
    x_big = jax.random.normal(kx2, (big_b, state_dim), jnp.float32)
    mu_b, ls_b = actor_forward(x_big, prepared)
    jax.block_until_ready((mu_b, ls_b))
    mu_br, ls_br = actor_reference(x_big, prepared)
    assert mu_b.shape == (big_b, 1) and ls_b.shape == (big_b, 1)
    assert jnp.allclose(mu_b, mu_br, atol=1e-3, rtol=1e-3), "mu (big batch) mismatch"
    assert jnp.allclose(ls_b, ls_br, atol=1e-3, rtol=1e-3), "log_std (big batch) mismatch"

    print("KERNEL_OK")
</pallas_src>

<mosaic_0001>
module attributes {stable_mosaic.version = 11 : i64} {
  func.func @actor_kernel(%arg0: i32, %arg1: memref<8x16xbf16, #tpu.memory_space<vmem>>, %arg2: memref<16x256xbf16, #tpu.memory_space<vmem>>, %arg3: memref<1x256xf32, #tpu.memory_space<vmem>>, %arg4: memref<256x256xbf16, #tpu.memory_space<vmem>>, %arg5: memref<1x256xf32, #tpu.memory_space<vmem>>, %arg6: memref<256x2xbf16, #tpu.memory_space<vmem>>, %arg7: memref<1x2xf32, #tpu.memory_space<vmem>>, %arg8: memref<8x2xf32, #tpu.memory_space<vmem>>) attributes {dimension_semantics = [#tpu.dimension_semantics<parallel>], iteration_bounds = array<i64: 1>, scalar_prefetch = 0 : i64, scratch_operands = 0 : i64, tpu.core_type = #tpu.core_type<tc>, window_params = [{transform_indices = @transform_0, window_bounds = array<i64: 8, 16>}, {pipeline_mode = #tpu.pipeline_mode<synchronous>, transform_indices = @transform_1, window_bounds = array<i64: 16, 256>}, {pipeline_mode = #tpu.pipeline_mode<synchronous>, transform_indices = @transform_2, window_bounds = array<i64: 1, 256>}, {pipeline_mode = #tpu.pipeline_mode<synchronous>, transform_indices = @transform_3, window_bounds = array<i64: 256, 256>}, {pipeline_mode = #tpu.pipeline_mode<synchronous>, transform_indices = @transform_4, window_bounds = array<i64: 1, 256>}, {pipeline_mode = #tpu.pipeline_mode<synchronous>, transform_indices = @transform_5, window_bounds = array<i64: 256, 2>}, {pipeline_mode = #tpu.pipeline_mode<synchronous>, transform_indices = @transform_6, window_bounds = array<i64: 1, 2>}, {transform_indices = @transform_7, window_bounds = array<i64: 8, 2>}]} {
    %c0 = arith.constant 0 : index
    %c0_0 = arith.constant 0 : index
    %0 = vector.load %arg1[%c0, %c0_0] : memref<8x16xbf16, #tpu.memory_space<vmem>>, vector<8x16xbf16>
    %c0_1 = arith.constant 0 : index
    %c0_2 = arith.constant 0 : index
    %1 = vector.load %arg2[%c0_1, %c0_2] : memref<16x256xbf16, #tpu.memory_space<vmem>>, vector<16x256xbf16>
    %cst = arith.constant dense<0.000000e+00> : vector<8x256xf32>
    %2 = tpu.matmul %0, %1, %cst {dimension_numbers = #tpu.dot_dimension_numbers<[1], [0], [0], [1], [0, 0, 1, 1], [], []>} : vector<8x16xbf16>, vector<16x256xbf16>, vector<8x256xf32> -> vector<8x256xf32>
    %c0_3 = arith.constant 0 : index
    %c0_4 = arith.constant 0 : index
    %3 = vector.load %arg3[%c0_3, %c0_4] : memref<1x256xf32, #tpu.memory_space<vmem>>, vector<1x256xf32>
    %4 = vector.broadcast %3 : vector<1x256xf32> to vector<8x256xf32>
    %5 = arith.addf %2, %4 : vector<8x256xf32>
    %cst_5 = arith.constant 0.000000e+00 : f32
    %6 = vector.broadcast %cst_5 : f32 to vector<8x256xf32>
    %7 = arith.maximumf %5, %6 : vector<8x256xf32>
    %8 = arith.truncf %7 : vector<8x256xf32> to vector<8x256xbf16>
    %c0_6 = arith.constant 0 : index
    %c0_7 = arith.constant 0 : index
    %9 = vector.load %arg4[%c0_6, %c0_7] : memref<256x256xbf16, #tpu.memory_space<vmem>>, vector<256x256xbf16>
    %cst_8 = arith.constant dense<0.000000e+00> : vector<8x256xf32>
    %10 = tpu.matmul %8, %9, %cst_8 {dimension_numbers = #tpu.dot_dimension_numbers<[1], [0], [0], [1], [0, 0, 1, 1], [], []>} : vector<8x256xbf16>, vector<256x256xbf16>, vector<8x256xf32> -> vector<8x256xf32>
    %c0_9 = arith.constant 0 : index
    %c0_10 = arith.constant 0 : index
    %11 = vector.load %arg5[%c0_9, %c0_10] : memref<1x256xf32, #tpu.memory_space<vmem>>, vector<1x256xf32>
    %12 = vector.broadcast %11 : vector<1x256xf32> to vector<8x256xf32>
    %13 = arith.addf %10, %12 : vector<8x256xf32>
    %cst_11 = arith.constant 0.000000e+00 : f32
    %14 = vector.broadcast %cst_11 : f32 to vector<8x256xf32>
    %15 = arith.maximumf %13, %14 : vector<8x256xf32>
    %16 = arith.truncf %15 : vector<8x256xf32> to vector<8x256xbf16>
    %c0_12 = arith.constant 0 : index
    %c0_13 = arith.constant 0 : index
    %17 = vector.load %arg6[%c0_12, %c0_13] : memref<256x2xbf16, #tpu.memory_space<vmem>>, vector<256x2xbf16>
    %cst_14 = arith.constant dense<0.000000e+00> : vector<8x2xf32>
    %18 = tpu.matmul %16, %17, %cst_14 {dimension_numbers = #tpu.dot_dimension_numbers<[1], [0], [0], [1], [0, 0, 1, 1], [], []>} : vector<8x256xbf16>, vector<256x2xbf16>, vector<8x2xf32> -> vector<8x2xf32>
    %c0_15 = arith.constant 0 : index
    %c0_16 = arith.constant 0 : index
    %19 = vector.load %arg7[%c0_15, %c0_16] : memref<1x2xf32, #tpu.memory_space<vmem>>, vector<1x2xf32>
    %20 = vector.broadcast %19 : vector<1x2xf32> to vector<8x2xf32>
    %21 = arith.addf %18, %20 : vector<8x2xf32>
    %cst_17 = arith.constant 0.000000e+00 : f32
    %22 = vector.broadcast %cst_17 : f32 to vector<8x2xf32>
    %23 = arith.maximumf %21, %22 : vector<8x2xf32>
    %cst_18 = arith.constant 2.000000e+00 : f32
    %24 = vector.broadcast %cst_18 : f32 to vector<8x2xf32>
    %25 = arith.minimumf %23, %24 : vector<8x2xf32>
    %26 = tpu.iota {dimensions = array<i32: 1>} : vector<8x2xi32>
    %c0_i32 = arith.constant 0 : i32
    %27 = vector.broadcast %c0_i32 : i32 to vector<8x2xi32>
    %28 = arith.cmpi eq, %26, %27 : vector<8x2xi32>
    %29 = arith.select %28, %21, %25 : vector<8x2xi1>, vector<8x2xf32>
    %c0_19 = arith.constant 0 : index
    %c0_20 = arith.constant 0 : index
    %30 = vector.load %arg8[%c0_19, %c0_20] : memref<8x2xf32, #tpu.memory_space<vmem>>, vector<8x2xf32>
    tpu.vector_store %arg8[%c0_19, %c0_20], %29 {strides = array<i32>} : memref<8x2xf32, #tpu.memory_space<vmem>>, vector<8x2xf32>,
    return
  }
  func.func @transform_0(%arg0: i32) -> (i32, i32) {
    %c0_i32 = arith.constant 0 : i32
    %c0_i32_0 = arith.constant 0 : i32
    return %arg0, %c0_i32 : i32, i32
  }
  func.func @transform_1(%arg0: i32) -> (i32, i32) {
    %c0_i32 = arith.constant 0 : i32
    %c0_i32_0 = arith.constant 0 : i32
    %c0_i32_1 = arith.constant 0 : i32
    return %c0_i32, %c0_i32_0 : i32, i32
  }
  func.func @transform_2(%arg0: i32) -> (i32, i32) {
    %c0_i32 = arith.constant 0 : i32
    %c0_i32_0 = arith.constant 0 : i32
    %c0_i32_1 = arith.constant 0 : i32
    return %c0_i32, %c0_i32_0 : i32, i32
  }
  func.func @transform_3(%arg0: i32) -> (i32, i32) {
    %c0_i32 = arith.constant 0 : i32
    %c0_i32_0 = arith.constant 0 : i32
    %c0_i32_1 = arith.constant 0 : i32
    return %c0_i32, %c0_i32_0 : i32, i32
  }
  func.func @transform_4(%arg0: i32) -> (i32, i32) {
    %c0_i32 = arith.constant 0 : i32
    %c0_i32_0 = arith.constant 0 : i32
    %c0_i32_1 = arith.constant 0 : i32
    return %c0_i32, %c0_i32_0 : i32, i32
  }
  func.func @transform_5(%arg0: i32) -> (i32, i32) {
    %c0_i32 = arith.constant 0 : i32
    %c0_i32_0 = arith.constant 0 : i32
    %c0_i32_1 = arith.constant 0 : i32
    return %c0_i32, %c0_i32_0 : i32, i32
  }
  func.func @transform_6(%arg0: i32) -> (i32, i32) {
    %c0_i32 = arith.constant 0 : i32
    %c0_i32_0 = arith.constant 0 : i32
    %c0_i32_1 = arith.constant 0 : i32
    return %c0_i32, %c0_i32_0 : i32, i32
  }
  func.func @transform_7(%arg0: i32) -> (i32, i32) {
    %c0_i32 = arith.constant 0 : i32
    %c0_i32_0 = arith.constant 0 : i32
    return %arg0, %c0_i32 : i32, i32
  }
}

</mosaic_0001>

<bundles_post_ra>
// kernel: tpu_custom_call.1
= control target key start
LH: loop header
LB: loop body
LE: loop exit
PB: predicated region body
PF: predicated region fallthrough
CT: control target
= control target key end

     0   :  { %12 = vsyncpa [#allocation3], 0  ;;  %s721_s24 = smov [#allocation2]   ;;  %s846_s0 = inlined_call_operand.vmem [shape: bf16[8,16], index: 0, kind: input, shape index: {}]   ;;  %s847_s1 = inlined_call_operand.vmem [shape: bf16[16,256], index: 1, kind: input, shape index: {}]   ;;  %s848_s2 = inlined_call_operand.vmem [shape: f32[1,256], index: 2, kind: input, shape index: {}]   ;;  %s849_s3 = inlined_call_operand.hbm [shape: bf16[256,256], index: 3, kind: input, shape index: {}]   ;;  %s850_s4 = inlined_call_operand.vmem [shape: f32[1,256], index: 4, kind: input, shape index: {}]   ;;  %s851_s5 = inlined_call_operand.vmem [shape: bf16[256,2], index: 5, kind: input, shape index: {}]   ;;  %s852_s6 = inlined_call_operand.vmem [shape: f32[1,2], index: 6, kind: input, shape index: {}]   ;;  %s853_s7 = inlined_call_operand.vmem [shape: f32[8,2], index: 7, kind: output, shape index: {}]  }
   0x1   :  { %s24_s25 = sshll.u32 %s721_s24, 4  ;;  %s697_s28 = scalar_lea.hbm %s849_s3, 4096  ;;  %s25_s25 = int_to_ptr.vmem [resolvable:$true] %s24_s25 }
   0x2   :  { %p698_p0 = scmp.ne.s32.totalorder %s849_s3, %s697_s28  ;;  %p701_p1 = scmp.lt.u32.totalorder %s697_s28, %s849_s3 }
   0x4   :  { %p703_p2 = pnand %p701_p1, %p698_p0 }
   0x6   :  { %706 = shalt.err (!%p703_p2)
}
   0x7   :  { %s707_s10 = scalar_lea.vmem %s25_s25, 4096  ;;  %p712_p4 = scmp.lt.s32.totalorder %s25_s25, %s25_s25 }
   0x8   :  { %p708_p3 = scmp.ne.s32.totalorder %s25_s25, %s707_s10  ;;  %p713_p5 = scmp.lt.s32.totalorder %s707_s10, %s707_s10 }
   0xa   :  { %p714_p6 = por %p713_p5, %p712_p4 }
   0xc   :  { %p715_p7 = pnand %p714_p6, %p708_p3 }
   0xe   :  { %718 = shalt.err (!%p715_p7)
}
   0xf   :  { %s722_s11 = smov 128   ;;  %s723_s12 = smov 8  }
  0x10   :  { %30 = dma.hbm_to_vmem [thread:$0]  %s849_s3, 4096, %s25_s25, [#allocation3], %s722_s11, %s722_s11, %s723_s12  }
  0x11   :  { %719 = dma.done.wait [#allocation3], 4096  }
  0x12   :  { %720 = vsyncadd [#allocation3], 4294963200  ;;  %v724_v0 = vmov 0   ;;  %v630_v1 = vld [vmem:[%s847_s1 + $0x4] ss:$8 sps:$4 sm:$0xff]   ;;  %vm66_vm0 = vcmask 130048   ;;  %v46_v48 = vlaneseq }
  0x13   :  { %102 = vmatprep.mubr.bf16.mxu0 %v724_v0  ;;  %v632_v2 = vld [vmem:[%s847_s1] ss:$8 sps:$4 sm:$0xff]   ;;  %70 = vmatprep.subr.bf16.mxu0 %v630_v1  ;;  %v633_v4 = vld [vmem:[#allocation2 + $0x4] ss:$8 sps:$4 sm:$0xff]   ;;  %v636_v6 = vld [vmem:[#allocation2 + $0x14] ss:$8 sps:$4 sm:$0xff]  }
  0x14   :  { %v41_v3 = vld [vmem:[%s846_s0] sm:$0xf]  ;;  %71 = vmatpush1.bf16.msra.mxu0 %v632_v2  ;;  %319 = vmatprep.subr.bf16.mxu1 %v633_v4  ;;  %v638_v7 = vld [vmem:[#allocation2 + $0x10] ss:$8 sps:$4 sm:$0xff]   ;;  %v639_v8 = vld [vmem:[#allocation2 + $0x24] ss:$8 sps:$4 sm:$0xff]  }
  0x15   :  { %v635_v5 = vld [vmem:[#allocation2] ss:$8 sps:$4 sm:$0xff]   ;;  %v642_v10 = vld [vmem:[#allocation2 + $0x34] ss:$8 sps:$4 sm:$0xff]   ;;  %v644_v11 = vld [vmem:[#allocation2 + $0x30] ss:$8 sps:$4 sm:$0xff]  }
  0x16   :  { %320 = vmatpush1.bf16.msra.mxu1 %v635_v5  ;;  %v641_v9 = vld [vmem:[#allocation2 + $0x20] ss:$8 sps:$4 sm:$0xff]   ;;  %v645_v12 = vld [vmem:[#allocation2 + $0x44] ss:$8 sps:$4 sm:$0xff]   ;;  %v648_v14 = vld [vmem:[#allocation2 + $0x54] ss:$8 sps:$4 sm:$0xff]  }
  0x17   :  { %554 = vmatmul.mubr.msk.bf16.vlgmr.msra.gmra.mrb[0].mxu0 %vm66_vm0, %v41_v3  ;;  %321 = vmatprep.subr.bf16.mxu1 %v636_v6  ;;  %v647_v13 = vld [vmem:[#allocation2 + $0x40] ss:$8 sps:$4 sm:$0xff]   ;;  %v650_v15 = vld [vmem:[#allocation2 + $0x50] ss:$8 sps:$4 sm:$0xff]   ;;  %v651_v16 = vld [vmem:[#allocation2 + $0x64] ss:$8 sps:$4 sm:$0xff]  }
  0x18   :  { %v653_v17 = vld [vmem:[#allocation2 + $0x60] ss:$8 sps:$4 sm:$0xff]   ;;  %v654_v18 = vld [vmem:[#allocation2 + $0x74] ss:$8 sps:$4 sm:$0xff]   ;;  %v656_v19 = vld [vmem:[#allocation2 + $0x70] ss:$8 sps:$4 sm:$0xff]  }
  0x19   :  { %v657_v20 = vld [vmem:[#allocation2 + $0x84] ss:$8 sps:$4 sm:$0xff]   ;;  %v659_v21 = vld [vmem:[#allocation2 + $0x80] ss:$8 sps:$4 sm:$0xff]   ;;  %v660_v22 = vld [vmem:[#allocation2 + $0x94] ss:$8 sps:$4 sm:$0xff]  }
  0x1a   :  { %322 = vmatpush1.bf16.msra.mxu1 %v638_v7  ;;  %v662_v23 = vld [vmem:[#allocation2 + $0x90] ss:$8 sps:$4 sm:$0xff]   ;;  %v663_v24 = vld [vmem:[#allocation2 + $0xa4] ss:$8 sps:$4 sm:$0xff]   ;;  %v665_v25 = vld [vmem:[#allocation2 + $0xa0] ss:$8 sps:$4 sm:$0xff]  }
  0x1b   :  { %323 = vmatprep.subr.bf16.mxu1 %v639_v8  ;;  %v666_v26 = vld [vmem:[#allocation2 + $0xb4] ss:$8 sps:$4 sm:$0xff]   ;;  %v668_v27 = vld [vmem:[#allocation2 + $0xb0] ss:$8 sps:$4 sm:$0xff]   ;;  %v669_v28 = vld [vmem:[#allocation2 + $0xc4] ss:$8 sps:$4 sm:$0xff]  }
  0x1c   :  { %v671_v29 = vld [vmem:[#allocation2 + $0xc0] ss:$8 sps:$4 sm:$0xff]   ;;  %v672_v30 = vld [vmem:[#allocation2 + $0xd4] ss:$8 sps:$4 sm:$0xff]   ;;  %v674_v31 = vld [vmem:[#allocation2 + $0xd0] ss:$8 sps:$4 sm:$0xff]  }
  0x1d   :  { %v675_v32 = vld [vmem:[#allocation2 + $0xe4] ss:$8 sps:$4 sm:$0xff]   ;;  %v677_v33 = vld [vmem:[#allocation2 + $0xe0] ss:$8 sps:$4 sm:$0xff]   ;;  %v678_v34 = vld [vmem:[#allocation2 + $0xf4] ss:$8 sps:$4 sm:$0xff]  }
  0x1e   :  { %324 = vmatpush1.bf16.msra.mxu1 %v641_v9  ;;  %v680_v35 = vld [vmem:[#allocation2 + $0xf0] ss:$8 sps:$4 sm:$0xff]   ;;  %v681_v36 = vld [vmem:[%s851_s5 + $0x40] sm:$0xff]   ;;  %v683_v38 = vld [vmem:[%s851_s5 + $0x48] sm:$0xff]   ;;  %v47_v49 = vshrl.u32 %v46_v48, 7  ;;  %vm545_vm2 = vcmask 15360  }
  0x1f   :  { %325 = vmatprep.subr.bf16.mxu1 %v642_v10  ;;  %v682_v37 = vld [vmem:[%s851_s5] sm:$0xff]   ;;  %604 = vmatprep.subr.bf16.mxu0 %v681_v36  ;;  %v684_v39 = vld [vmem:[%s851_s5 + $0x8] sm:$0xff]   ;;  %v685_v40 = vld [vmem:[%s851_s5 + $0x50] sm:$0xff]  }
  0x20   :  { %605 = vmatpush3.bf16.msra.mxu0 %v682_v37  ;;  %v686_v41 = vld [vmem:[%s851_s5 + $0x10] sm:$0xff]   ;;  %v687_v42 = vld [vmem:[%s851_s5 + $0x58] sm:$0xff]   ;;  %v689_v44 = vld [vmem:[%s851_s5 + $0x60] sm:$0xff]   ;;  %v48_v50 = vsub.s32 0, %v47_v49  ;;  %v52_v52 = vsub.s32 1, %v47_v49 }
  0x21   :  { %606 = vmatprep.subr.bf16.mxu0 %v683_v38  ;;  %v688_v43 = vld [vmem:[%s851_s5 + $0x18] sm:$0xff]   ;;  %v690_v45 = vld [vmem:[%s851_s5 + $0x20] sm:$0xff]   ;;  %v691_v46 = vld [vmem:[%s851_s5 + $0x68] sm:$0xff]  }
  0x22   :  { %326 = vmatpush1.bf16.msra.mxu1 %v644_v11  ;;  %v692_v47 = vld [vmem:[%s851_s5 + $0x28] sm:$0xff]   ;;  %v44_v51 = vld [vmem:[%s848_s2] sm:$0x3]  ;;  %v693_v1 = vld [vmem:[%s851_s5 + $0x70] sm:$0xff]  }
  0x23   :  { %327 = vmatprep.subr.bf16.mxu1 %v645_v12  ;;  %v49_v53 = vrot.slane %v44_v51, %v48_v50  ;;  %v53_v54 = vrot.slane %v44_v51, %v52_v52  ;;  %v694_v2 = vld [vmem:[%s851_s5 + $0x30] sm:$0xff]   ;;  %v695_v3 = vld [vmem:[%s851_s5 + $0x78] sm:$0xff]   ;;  %v147_v5 = vld [vmem:[%s850_s4] sm:$0x3] }
  0x24   :  { %607 = vmatpush3.bf16.msra.mxu0 %v684_v39  ;;  %v696_v4 = vld [vmem:[%s851_s5 + $0x38] sm:$0xff]   ;;  %v152_v6 = vrot.slane %v147_v5, %v48_v50  ;;  %v156_v7 = vrot.slane %v147_v5, %v52_v52 }
  0x25   :  { %608 = vmatprep.subr.bf16.mxu0 %v685_v40 }
  0x26   :  { %328 = vmatpush1.bf16.msra.mxu1 %v647_v13 }
  0x27   :  { %329 = vmatprep.subr.bf16.mxu1 %v648_v14 }
  0x28   :  { %609 = vmatpush3.bf16.msra.mxu0 %v686_v41 }
  0x29   :  { %610 = vmatprep.subr.bf16.mxu0 %v687_v42 }
  0x2a   :  { %330 = vmatpush1.bf16.msra.mxu1 %v650_v15 }
  0x2b   :  { %331 = vmatprep.subr.bf16.mxu1 %v651_v16 }
  0x2c   :  { %611 = vmatpush3.bf16.msra.mxu0 %v688_v43 }
  0x2d   :  { %612 = vmatprep.subr.bf16.mxu0 %v689_v44 }
  0x2e   :  { %332 = vmatpush1.bf16.msra.mxu1 %v653_v17 }
  0x2f   :  { %333 = vmatprep.subr.bf16.mxu1 %v654_v18 }
  0x30   :  { %613 = vmatpush3.bf16.msra.mxu0 %v690_v45 }
  0x31   :  { %614 = vmatprep.subr.bf16.mxu0 %v691_v46 }
  0x32   :  { %334 = vmatpush1.bf16.msra.mxu1 %v656_v19  ;;  %v587_v19 = vld [vmem:[%s852_s6] ss:$0 sm:$0xff] }
  0x33   :  { %335 = vmatprep.subr.bf16.mxu1 %v657_v20 }
  0x34   :  { %615 = vmatpush3.bf16.msra.mxu0 %v692_v47 }
  0x35   :  { %616 = vmatprep.subr.bf16.mxu0 %v693_v1 }
  0x36   :  { %336 = vmatpush1.bf16.msra.mxu1 %v659_v21 }
  0x37   :  { %337 = vmatprep.subr.bf16.mxu1 %v660_v22 }
  0x38   :  { %617 = vmatpush3.bf16.msra.mxu0 %v694_v2 }
  0x39   :  { %618 = vmatprep.subr.bf16.mxu0 %v695_v3 }
  0x3a   :  { %338 = vmatpush1.bf16.msra.mxu1 %v662_v23  ;;  %v542_v23 = vand.u32 127, %v46_v48 }
  0x3b   :  { %339 = vmatprep.subr.bf16.mxu1 %v663_v24 }
  0x3c   :  { %619 = vmatpush3.bf16.msra.mxu0 %v696_v4  ;;  %vm543_vm1 = vcmp.eq.s32.totalorder %v542_v23, 0 }
  0x3e   :  { %340 = vmatpush1.bf16.msra.mxu1 %v665_v25 }
  0x3f   :  { %341 = vmatprep.subr.bf16.mxu1 %v666_v26 }
  0x42   :  { %342 = vmatpush1.bf16.msra.mxu1 %v668_v27 }
  0x43   :  { %343 = vmatprep.subr.bf16.mxu1 %v669_v28 }
  0x46   :  { %344 = vmatpush1.bf16.msra.mxu1 %v671_v29 }
  0x47   :  { %345 = vmatprep.subr.bf16.mxu1 %v672_v30 }
  0x4a   :  { %346 = vmatpush1.bf16.msra.mxu1 %v674_v31 }
  0x4b   :  { %347 = vmatprep.subr.bf16.mxu1 %v675_v32 }
  0x4e   :  { %348 = vmatpush1.bf16.msra.mxu1 %v677_v33 }
  0x4f   :  { %349 = vmatprep.subr.bf16.mxu1 %v678_v34 }
  0x52   :  { %350 = vmatpush1.bf16.msra.mxu1 %v680_v35 }
  0xea   :  { %v104_v55 = vpop.f32.mrb[0].mxu0 }
  0xeb   :  { %v105_v56 = vadd.f32 %v104_v55, %v49_v53  ;;  %v106_v57 = vpop.f32.mrb[1].mxu0 }
  0xec   :  { %v107_v58 = vadd.f32 %v106_v57, %v53_v54  ;;  %v108_v59 = vpop.f32.mrb[2].mxu0 }
  0xed   :  { %v111_v60 = vmax.f32 %v105_v56, 0.0  ;;  %v109_v61 = vpop.f32.mrb[3].mxu0 }
  0xee   :  { %v112_v62 = vmax.f32 %v107_v58, 0.0 }
  0xef   :  { %v113_v0 = vpack.c.bf16 %v111_v60, %v111_v60 }
  0xf0   :  { %v114_v63 = vpack.c.bf16 %v112_v62, %v112_v62 }
  0xf2   :  { %351 = vmatprep.mubr.bf16.mxu1 %v114_v63 }
  0xf3   :  { %352 = vmatmul.mubr.bf16.vlgmr.msra.gmra.mrb[0].mxu1 %v113_v0 }
 0x1c6   :  { %v353_v8 = vpop.f32.mrb[0].mxu1 }
 0x1c7   :  { %v354_v9 = vadd.f32 %v353_v8, %v152_v6  ;;  %v355_v10 = vpop.f32.mrb[1].mxu1 }
 0x1c8   :  { %v356_v11 = vadd.f32 %v355_v10, %v156_v7  ;;  %v357_v12 = vpop.f32.mrb[2].mxu1 }
 0x1c9   :  { %v360_v13 = vmax.f32 %v354_v9, 0.0  ;;  %v358_v14 = vpop.f32.mrb[3].mxu1 }
 0x1ca   :  { %v361_v15 = vmax.f32 %v356_v11, 0.0 }
 0x1cb   :  { %v362_v17 = vpack.c.bf16 %v360_v13, %v360_v13 }
 0x1cc   :  { %v363_v16 = vpack.c.bf16 %v361_v15, %v361_v15 }
 0x1ce   :  { %531 = vmatprep.mubr.bf16.mxu0 %v363_v16 }
 0x1cf   :  { %532 = vmatmul.mubr.bf16.vlgmr.msra.gmra.mrb[4].mxu0 %v362_v17 }
 0x2a2   :  { %v620_v18 = vpop.f32.mrb[4].mxu0 }
 0x2a3   :  { %v621_v20 = vpop.f32.mrb[5].mxu0 }
 0x2a4   :  { %v622_v21 = vadd.f32 %v621_v20, %v620_v18  ;;  %v623_v22 = vpop.f32.mrb[6].mxu0 }
 0x2a5   :  { %v624_v24 = vpop.f32.mrb[7].mxu0 }
 0x2a6   :  { %v534_v25 = vadd.f32 %v622_v21, %v587_v19 }
 0x2a8   :  { %v539_v26 = vmax.f32 %v534_v25, 0.0 }
 0x2aa   :  { %v540_v27 = vmin.f32 %v539_v26, 2.0 }
 0x2ac   :  { %v544_v28 = vsel %vm543_vm1, %v534_v25, %v540_v27 }
 0x2ad   :  { %546 = vst.msk [vmem:[%s853_s7] sm:$0xff] %vm545_vm2, %v544_v28 }
 0x2ae   :  { %551 = vsyncpa [#allocation3], 1 }

</bundles_post_ra>
